<compile_context>
chip_gen: v7x
topology: tpu7x:2x2x1
jax: 0.10.0
libtpu: 0.0.40
codegen_flags: <defaults>
</compile_context>

<pallas_src>
import numpy as np
import jax
import jax.numpy as jnp
from jax.experimental import pallas as pl
from jax.experimental.pallas import tpu as pltpu


def _round_up(x: int, m: int) -> int:
    return ((x + m - 1) // m) * m


# Per-generation A-tile budgets: (tk_max, tn_max, vmem_limit_bytes).
_GEN_CONFIG = {
    "v5e":     (2048, 512,  64 * 1024 * 1024),   # 128 MiB phys, 16 MiB scoped default
    "v6e":     (4096, 1024, 96 * 1024 * 1024),   # 128 MiB phys, 32 MiB scoped default
    "v7x":     (4096, 1024, 48 * 1024 * 1024),   # only 64 MiB phys -> tighter budget
    "unknown": (2048, 512,  None),               # conservative, fits old gens too
}

# Keep the flattened-image LHS fully VMEM-resident when it is this small.
_X_RESIDENT_BUDGET = 4 * 1024 * 1024


def _tpu_generation() -> str:
    try:
        kind = jax.devices()[0].device_kind.lower()
    except Exception:
        return "unknown"
    if "v5 lite" in kind or "v5e" in kind or "v5lite" in kind:
        return "v5e"
    if "v6" in kind:
        return "v6e"
    if "v7" in kind or "7x" in kind:
        return "v7x"
    return "unknown"


# ----------------------------------------------------------------------------
# System-matrix construction (setup glue -- mirrors skimage's radon exactly:
# inverse rotation about the center, bilinear interpolation, zero padding,
# sum over image rows).
# ----------------------------------------------------------------------------
def build_radon_matrix(n: int, theta_deg) -> jnp.ndarray:
    """System matrix A of shape (n*n, num_angles*n) such that

        sino_flat[a*n + det] = sum_{r,c} img[r, c] * A[r*n + c, a*n + det]

    reproduces skimage.transform.radon(img, theta, circle=True)."""
    theta = np.deg2rad(np.asarray(theta_deg, dtype=np.float64))         # (A,)
    center = float(n // 2)

    cos_a = np.cos(theta)[:, None, None]                                # (A,1,1)
    sin_a = np.sin(theta)[:, None, None]
    row_o = np.arange(n, dtype=np.float64)[None, :, None]               # y_o
    col_o = np.arange(n, dtype=np.float64)[None, None, :]               # x_o (= detector)

    # skimage radon: warp(image, R) with the inverse map R about the center.
    x_i = cos_a * col_o + sin_a * row_o - center * (cos_a + sin_a - 1.0)   # (A,n,n)
    y_i = -sin_a * col_o + cos_a * row_o - center * (cos_a - sin_a - 1.0)  # (A,n,n)

    coords = np.arange(n, dtype=np.float64)
    # Bilinear "tent" weights; samples outside [0, n-1] get zero weight,
    # reproducing warp(..., mode='constant', cval=0).
    wx = np.maximum(0.0, 1.0 - np.abs(x_i[..., None] - coords)).astype(np.float32)  # (A,n,n,nc)
    wy = np.maximum(0.0, 1.0 - np.abs(y_i[..., None] - coords)).astype(np.float32)  # (A,n,n,nr)

    # Contract over the output rows (the projection sum) WITHOUT materialising
    # the (A, n, n, n, n) outer product:  M[a, det, r, c].
    M = jnp.einsum('aijr,aijc->ajrc',
                   jnp.asarray(wy), jnp.asarray(wx),
                   precision=jax.lax.Precision.HIGHEST)

    # A[r*n + c, a*n + det] = M[a, det, r, c]
    return M.transpose(2, 3, 0, 1).reshape(n * n, -1).astype(jnp.float32)


# ----------------------------------------------------------------------------
# Block-sparsity table: for every output p-tile, the list of k-tile indices
# whose A tile is non-zero, padded (per p-tile) with an index whose tile IS
# zero so padded steps contribute exactly 0.
# ----------------------------------------------------------------------------
def _build_nz_table(a_np: np.ndarray, tk: int, tn: int):
    k_pad, p_pad = a_np.shape
    num_kt, num_pt = k_pad // tk, p_pad // tn
    tiles = a_np.reshape(num_kt, tk, num_pt, tn)
    nonzero = np.any(tiles != 0.0, axis=(1, 3))          # (num_kt, num_pt)
    lists = [list(np.nonzero(nonzero[:, pi])[0]) for pi in range(num_pt)]
    k_steps = max(1, max(len(l) for l in lists))
    table = np.zeros((num_pt, k_steps), np.int32)
    for pi, lst in enumerate(lists):
        row = list(lst)
        if len(row) < k_steps:
            used = set(row)
            # len(row) < k_steps <= num_kt, so an all-zero tile index exists.
            pad_idx = next(ki for ki in range(num_kt) if ki not in used)
            row += [pad_idx] * (k_steps - len(row))
        table[pi] = np.asarray(row, np.int32)
    nnz_tiles = int(nonzero.sum())
    # Flatten to 1-D so the SMEM footprint stays tiny (2-D SMEM pads to
    # multiples of (8, 128) words).
    return table.reshape(-1), k_steps, nnz_tiles


# ----------------------------------------------------------------------------
# Pallas kernel: tiled, block-sparse projection matmul (the hot path)
# ----------------------------------------------------------------------------
def _make_kernel(tk: int, k_steps: int, x_resident: bool):
    def kernel(nz_ref, x_ref, a_ref, o_ref):
        p = pl.program_id(0)
        k = pl.program_id(1)          # reduction ("arbitrary") axis, innermost

        @pl.when(k == 0)
        def _init():
            o_ref[...] = jnp.zeros_like(o_ref)   # output block revisited over k

        if x_resident:
            # Whole flattened image lives in VMEM; slice the k-tile matching
            # the (block-sparse) A tile picked for this step.
            ki = nz_ref[p * k_steps + k]
            start = pl.multiple_of(ki * tk, tk)
            x_tile = x_ref[:, pl.ds(start, tk)]
        else:
            x_tile = x_ref[...]

        o_ref[...] += jnp.dot(x_tile, a_ref[...],
                              preferred_element_type=jnp.float32)
    return kernel


def _make_projector(n, n_ang, batch, m_pad, k_pad, p_pad, tk, tn, k_steps,
                    num_pt, compute_dtype, x_resident, vmem_limit, nnz_tiles):
    grid = (num_pt, k_steps)
    dtype_bytes = jnp.dtype(compute_dtype).itemsize

    if x_resident:
        # Constant block index -> DMAed once, stays resident across the grid.
        x_spec = pl.BlockSpec((m_pad, k_pad), lambda p, k, nz: (0, 0))
    else:
        x_spec = pl.BlockSpec((m_pad, tk),
                              lambda p, k, nz: (0, nz[p * k_steps + k]))
    a_spec = pl.BlockSpec((tk, tn),
                          lambda p, k, nz: (nz[p * k_steps + k], p))
    o_spec = pl.BlockSpec((m_pad, tn), lambda p, k, nz: (0, p))

    cost = pl.CostEstimate(
        flops=int(2 * m_pad * tk * tn * num_pt * k_steps),
        transcendentals=0,
        bytes_accessed=int(nnz_tiles * tk * tn * dtype_bytes
                           + m_pad * k_pad * dtype_bytes
                           + m_pad * p_pad * 4))

    proj = pl.pallas_call(
        _make_kernel(tk, k_steps, x_resident),
        out_shape=jax.ShapeDtypeStruct((m_pad, p_pad), jnp.float32),
        grid_spec=pltpu.PrefetchScalarGridSpec(
            num_scalar_prefetch=1,                 # the non-zero k-tile table
            grid=grid,
            in_specs=[x_spec, a_spec],
            out_specs=o_spec,
        ),
        compiler_params=pltpu.CompilerParams(
            dimension_semantics=("parallel", "arbitrary"),
            vmem_limit_bytes=vmem_limit),
        cost_estimate=cost,
    )

    @jax.jit
    def forward(xb, a_pad, nz):
        # xb: (batch, n, n) float
        x_flat = xb.reshape(batch, n * n).astype(compute_dtype)
        x_pad = jnp.zeros((m_pad, k_pad), compute_dtype)
        x_pad = x_pad.at[:batch, : n * n].set(x_flat)
        out = proj(nz, x_pad, a_pad)                     # (m_pad, p_pad) f32
        sino = out[:batch, : n_ang * n].reshape(batch, n_ang, n)
        return jnp.transpose(sino, (0, 2, 1))            # (batch, n, n_ang)

    return forward


# ----------------------------------------------------------------------------
# ForwardPhysicalModel equivalent
# ----------------------------------------------------------------------------
class ForwardPhysicalModelPallas:
    """Pallas/TPU equivalent of ForwardPhysicalModel: __call__(x) with a
    square (N, N) image returns skimage radon(x, theta, circle=True); a
    batch (B, N, N) returns (B, N, num_angles).  The system matrix, the
    block-sparsity table and the compiled projector are built once per
    (image size, batch size) and cached."""

    def __init__(self, views_theta, compute_dtype=jnp.bfloat16):
        self.views_theta = np.asarray(views_theta, dtype=np.float64)
        self.compute_dtype = compute_dtype
        tk_max, tn_max, vmem_limit = _GEN_CONFIG[_tpu_generation()]
        self._tk_max, self._tn_max, self._vmem_limit = tk_max, tn_max, vmem_limit
        self._mat_cache = {}    # n -> dict(a_pad, nz, tk, tn, k_pad, p_pad, ...)
        self._proj_cache = {}   # (n, m_pad) -> jitted forward

    # -- cached padded system matrix + sparsity table ------------------------
    def _matrices(self, n):
        entry = self._mat_cache.get(n)
        if entry is None:
            n_ang = int(self.views_theta.shape[0])
            a_f32 = np.asarray(build_radon_matrix(n, self.views_theta))  # (k, p)
            k, p = a_f32.shape

            tk = min(self._tk_max, _round_up(k, 128))
            # Prefer >= 2 p-tiles (keeps v7x's second TensorCore busy).
            p128 = _round_up(p, 128)
            tn_target = max(128, _round_up(p128 // 2, 128)) if p128 >= 256 else 128
            tn = min(self._tn_max, tn_target)

            k_pad = _round_up(k, tk)
            p_pad = _round_up(p, tn)
            a_np = np.zeros((k_pad, p_pad), np.float32)
            a_np[:k, :p] = a_f32

            nz_np, k_steps, nnz_tiles = _build_nz_table(a_np, tk, tn)
            a_pad = jnp.asarray(a_np).astype(self.compute_dtype)
            nz = jnp.asarray(nz_np)

            entry = dict(n_ang=n_ang, a_pad=a_pad, nz=nz, tk=tk, tn=tn,
                         k_pad=k_pad, p_pad=p_pad, k_steps=k_steps,
                         num_pt=p_pad // tn, nnz_tiles=nnz_tiles)
            self._mat_cache[n] = entry
        return entry

    # -- cached compiled projector for a given (n, batch) --------------------
    def _projector(self, n, batch):
        mats = self._matrices(n)
        m_pad = _round_up(max(batch, 1), 16)
        key = (n, m_pad, batch)
        fwd = self._proj_cache.get(key)
        if fwd is None:
            dtype_bytes = jnp.dtype(self.compute_dtype).itemsize
            x_resident = m_pad * mats["k_pad"] * dtype_bytes <= _X_RESIDENT_BUDGET
            fwd = _make_projector(
                n, mats["n_ang"], batch, m_pad,
                mats["k_pad"], mats["p_pad"], mats["tk"], mats["tn"],
                mats["k_steps"], mats["num_pt"], self.compute_dtype,
                x_resident, self._vmem_limit, mats["nnz_tiles"])
            self._proj_cache[key] = fwd
        return fwd, mats["a_pad"], mats["nz"]

    def __call__(self, x):
        x = jnp.asarray(x)
        if x.ndim == 2:
            assert x.shape[0] == x.shape[1], "expects a square 2-D image"
            fwd, a_pad, nz = self._projector(int(x.shape[0]), 1)
            return fwd(x[None], a_pad, nz)[0]
        assert x.ndim == 3 and x.shape[1] == x.shape[2], \
            "expects (B, N, N) batch of square images"
        fwd, a_pad, nz = self._projector(int(x.shape[1]), int(x.shape[0]))
        return fwd(x, a_pad, nz)


if __name__ == "__main__":
    views_theta = np.linspace(0.0, 180.0, 30, endpoint=False)

    key = jax.random.PRNGKey(0)
    N = 16
    B = 4
    xb = jax.random.uniform(key, (B, N, N), dtype=jnp.float32)

    model = ForwardPhysicalModelPallas(views_theta)

    # Batched forward (the main performance path: A stream amortised over B).
    sino_b = jax.block_until_ready(model(xb))
    assert sino_b.shape == (B, N, len(views_theta)), sino_b.shape
    assert np.isfinite(np.asarray(sino_b)).all()

    # Single-image forward keeps the original module semantics.
    sino_1 = jax.block_until_ready(model(xb[0]))
    assert sino_1.shape == (N, len(views_theta)), sino_1.shape
    np.testing.assert_allclose(np.asarray(sino_1), np.asarray(sino_b[0]),
                               rtol=1e-5, atol=1e-5)

    # --- check 1: dense JAX reference with identical bf16-in / f32-acc math -
    a_mat = build_radon_matrix(N, views_theta)
    ref = jnp.dot(xb.reshape(B, -1).astype(jnp.bfloat16),
                  a_mat.astype(jnp.bfloat16),
                  preferred_element_type=jnp.float32)
    ref = np.asarray(ref).reshape(B, len(views_theta), N).transpose(0, 2, 1)
    np.testing.assert_allclose(np.asarray(sino_b), ref, rtol=1e-3, atol=1e-3)

    # --- check 2 (analytic): 0-degree projection == column sums -------------
    np.testing.assert_allclose(np.asarray(sino_b[:, :, 0]),
                               np.asarray(xb.sum(axis=1)),
                               rtol=2e-2, atol=2e-2)

    # --- check 3 (analytic): 90 degrees (angle index 15) == reversed row sums
    # skimage convention (even N, center = N//2): detector d >= 1 reads image
    # row N-d; detector 0 samples outside the grid -> 0.
    row_sums = np.asarray(xb[0].sum(axis=1))
    expect_90 = np.zeros(N, np.float32)
    expect_90[1:] = row_sums[N - np.arange(1, N)]
    np.testing.assert_allclose(np.asarray(sino_b[0, :, 15]), expect_90,
                               rtol=2e-2, atol=2e-2)

    print("KERNEL_OK")
</pallas_src>

<mosaic_0001>
module attributes {stable_mosaic.version = 11 : i64} {
  func.func @kernel(%arg0: i32, %arg1: i32, %arg2: memref<2xi32, #tpu.memory_space<smem>>, %arg3: memref<16x256xbf16, #tpu.memory_space<vmem>>, %arg4: memref<256x256xbf16, #tpu.memory_space<vmem>>, %arg5: memref<16x256xf32, #tpu.memory_space<vmem>>) attributes {dimension_semantics = [#tpu.dimension_semantics<parallel>, #tpu.dimension_semantics<arbitrary>], iteration_bounds = array<i64: 2, 1>, scalar_prefetch = 1 : i64, scratch_operands = 0 : i64, tpu.core_type = #tpu.core_type<tc>, window_params = [{pipeline_mode = #tpu.pipeline_mode<synchronous>, transform_indices = @transform_0, window_bounds = array<i64: 16, 256>}, {transform_indices = @transform_1, window_bounds = array<i64: 256, 256>}, {transform_indices = @transform_2, window_bounds = array<i64: 16, 256>}]} {
    %c0_i32 = arith.constant 0 : i32
    %0 = arith.cmpi eq, %arg1, %c0_i32 : i32
    %1 = arith.extui %0 : i1 to i32
    %c0_i32_0 = arith.constant 0 : i32
    %2 = arith.cmpi ne, %1, %c0_i32_0 : i32
    scf.if %2 {
      %cst_7 = arith.constant 0.000000e+00 : f32
      %16 = vector.broadcast %cst_7 : f32 to vector<16x256xf32>
      %c0_8 = arith.constant 0 : index
      %c0_9 = arith.constant 0 : index
      %17 = vector.load %arg5[%c0_8, %c0_9] : memref<16x256xf32, #tpu.memory_space<vmem>>, vector<16x256xf32>
      tpu.vector_store %arg5[%c0_8, %c0_9], %16 {strides = array<i32>} : memref<16x256xf32, #tpu.memory_space<vmem>>, vector<16x256xf32>,
    } else {
    }
    %c1_i32 = arith.constant 1 : i32
    %3 = arith.muli %arg0, %c1_i32 : i32
    %4 = arith.addi %3, %arg1 : i32
    %5 = arith.index_cast %4 : i32 to index
    %6 = memref.load %arg2[%5] : memref<2xi32, #tpu.memory_space<smem>>
    %c256_i32 = arith.constant 256 : i32
    %7 = arith.muli %6, %c256_i32 : i32
    %8 = tpu.assume_multiple %7, 256 : i32
    %c0 = arith.constant 0 : index
    %9 = arith.index_cast %8 : i32 to index
    %10 = vector.load %arg3[%c0, %9] : memref<16x256xbf16, #tpu.memory_space<vmem>>, vector<16x256xbf16>
    %c0_1 = arith.constant 0 : index
    %c0_2 = arith.constant 0 : index
    %11 = vector.load %arg5[%c0_1, %c0_2] : memref<16x256xf32, #tpu.memory_space<vmem>>, vector<16x256xf32>
    %c0_3 = arith.constant 0 : index
    %c0_4 = arith.constant 0 : index
    %12 = vector.load %arg4[%c0_3, %c0_4] : memref<256x256xbf16, #tpu.memory_space<vmem>>, vector<256x256xbf16>
    %cst = arith.constant dense<0.000000e+00> : vector<16x256xf32>
    %13 = tpu.matmul %10, %12, %cst {dimension_numbers = #tpu.dot_dimension_numbers<[1], [0], [0], [1], [0, 0, 1, 1], [], []>} : vector<16x256xbf16>, vector<256x256xbf16>, vector<16x256xf32> -> vector<16x256xf32>
    %14 = arith.addf %11, %13 : vector<16x256xf32>
    %c0_5 = arith.constant 0 : index
    %c0_6 = arith.constant 0 : index
    %15 = vector.load %arg5[%c0_5, %c0_6] : memref<16x256xf32, #tpu.memory_space<vmem>>, vector<16x256xf32>
    tpu.vector_store %arg5[%c0_5, %c0_6], %14 {strides = array<i32>} : memref<16x256xf32, #tpu.memory_space<vmem>>, vector<16x256xf32>,
    return
  }
  func.func @transform_0(%arg0: i32, %arg1: i32, %arg2: memref<2xi32, #tpu.memory_space<smem>>) -> (i32, i32) {
    %c0_i32 = arith.constant 0 : i32
    %c0_i32_0 = arith.constant 0 : i32
    %c0_i32_1 = arith.constant 0 : i32
    return %c0_i32, %c0_i32_0 : i32, i32
  }
  func.func @transform_1(%arg0: i32, %arg1: i32, %arg2: memref<2xi32, #tpu.memory_space<smem>>) -> (i32, i32) {
    %c1_i32 = arith.constant 1 : i32
    %0 = arith.muli %arg0, %c1_i32 : i32
    %1 = arith.addi %0, %arg1 : i32
    %2 = arith.index_cast %1 : i32 to index
    %3 = memref.load %arg2[%2] : memref<2xi32, #tpu.memory_space<smem>>
    %c0_i32 = arith.constant 0 : i32
    return %3, %arg0 : i32, i32
  }
  func.func @transform_2(%arg0: i32, %arg1: i32, %arg2: memref<2xi32, #tpu.memory_space<smem>>) -> (i32, i32) {
    %c0_i32 = arith.constant 0 : i32
    %c0_i32_0 = arith.constant 0 : i32
    return %c0_i32, %arg0 : i32, i32
  }
}

</mosaic_0001>

<bundles_post_ra>
// kernel: forward.1
= control target key start
LH: loop header
LB: loop body
LE: loop exit
PB: predicated region body
PF: predicated region fallthrough
CT: control target
= control target key end

     0   :  { %s1101_s0 = inlined_call_operand.vmem [shape: s32[2], index: 0, kind: input, shape index: {}]   ;;  %s1102_s1 = inlined_call_operand.vmem [shape: bf16[16,256], index: 1, kind: input, shape index: {}]   ;;  %s1103_s2 = inlined_call_operand.hbm [shape: bf16[256,512], index: 2, kind: input, shape index: {}]   ;;  %s1104_s3 = inlined_call_operand.vmem [shape: f32[16,512], index: 3, kind: output, shape index: {}]  }
   0x1   :  { %s8_s14 = sshll.u32 %s1101_s0, 4  ;;  %s9_s14 = int_to_ptr.vmem [resolvable:$true] %s8_s14 }
   0x2   :  { %s761_s15 = scalar_lea.vmem %s9_s14, 16  ;;  %p766_p1 = scmp.lt.s32.totalorder %s9_s14, %s9_s14 }
   0x3   :  { %p762_p0 = scmp.ne.s32.totalorder %s9_s14, %s761_s15  ;;  %p767_p2 = scmp.lt.s32.totalorder %s761_s15, %s761_s15 }
   0x5   :  { %p768_p3 = por %p767_p2, %p766_p1 }
   0x7   :  { %p769_p4 = pnand %p768_p3, %p762_p0 }
   0x9   :  { %772 = shalt.err (!%p769_p4)  }
   0xa   :  { %s873_s16 = smov [#allocation3]  }
   0xb   :  { %11 = dma.vmem_to_smem %s9_s14, 16, %s873_s16, [#allocation2] }
   0xc   :  { %835 = dma.done.wait [#allocation2], 16 }
   0xd   :  { %836 = vsyncadd [#allocation2], 4294967280 }
   0xe   :  { %13 = sfence }
   0xf   :  { %14 = vsyncpa [#allocation5], 0 }
  0x10   :  { %16 = vsyncpa [#allocation5 + $0x1], 0  ;;  %s901_s17 = smov 0   ;;  %s903_s18 = smov 0  }
  0x11   :  { %s905_s0 = smov 0   ;;  %s907_s19 = smov 0  }
  0x12   :  { %s909_s20 = smov 0   ;;  %s911_s21 = smov 0  }
  0x13   :  { %s913_s22 = smov 0   ;;  %s915_s23 = smov 0  }
  0x14 LB: > { %s34_s24 = sadd.s32 1, %s867_s22  ;;  %s575_s25 = sadd.s32 4294967295, %s871_s23   ;;  %s871_s23 = sphi %s915_s23, %s22_s23   ;;  %s867_s22 = sphi %s913_s22, %s1118_s22   ;;  %s863_s21 = sphi %s911_s21, %s1117_s21   ;;  %s859_s20 = sphi %s909_s20, %s1116_s20   ;;  %s855_s19 = sphi %s907_s19, %s1115_s19   ;;  %s851_s0 = sphi %s905_s0, %s1114_s0   ;;  %s847_s18 = sphi %s903_s18, %s1113_s18   ;;  %s843_s17 = sphi %s901_s17, %s1112_s17  }
  0x15   : > { %p36_p5 = scmp.ge.s32.totalorder %s34_s24, 2  ;;  %s60_s26 = sld [smem:[#allocation3 + %s867_s22]] }
  0x16   : > { %s68_s27 = sadd.s32 1, %s859_s20  ;;  %p75_p6 = scmp.ne.s32.totalorder %s859_s20, %s855_s19 }
  0x17   : > { %s1120_s24 = smov (%p36_p5, %s34_s24), 0  ;;  %p81_p7 = scmp.ne.s32.totalorder %s855_s19, %s851_s0 }
  0x18   : > { %s62_s28 = sld [smem:[#allocation3 + %s1120_s24]]  ;;  %s64_s29 = ssub.s32 %s867_s22, %s1120_s24 }
  0x19   : > { %p76_p8 = scmp.eq.s32.totalorder %s871_s23, 0  ;;  %p82_p9 = scmp.eq.s32.totalorder %s575_s25, 0 }
  0x1a   : > { %p92_p10 = scmp.eq.s32.totalorder %s64_s29, 0  ;;  %s94_s30 = sadd.s32 1, %s847_s18 }
  0x1b   : > { %p953_p11 = por %p82_p9, %p81_p7  ;;  %p104_p12 = scmp.ne.s32.totalorder %s847_s18, %s843_s17 }
  0x1c   : > { %s960_s5 = scalar_select %p92_p10, %s847_s18, %s94_s30  }
  0x1d   : > { %s1106_s4 = scalar_select %p953_p11, 1, 0 }
  0x1e   : > { %p105_p13 = scmp.eq.s32.totalorder %s575_s25, 1  ;;  %s63_s6 = ssub.s32 %s60_s26, %s62_s28 }
  0x1f   : > { %p77_p0 = por %p76_p8, %p75_p6  ;;  %s65_s7 = sor.u32 %s64_s29, %s63_s6 }
  0x20   : > { %p965_p1 = por %p105_p13, %p104_p12  ;;  %p66_p2 = scmp.eq.s32.totalorder %s65_s7, 0 }
  0x21   : > { %s134_s9 = sand.u32 1, %s859_s20   ;;  %p640_p3 = scmp.lt.s32.totalorder %s871_s23, 2 }
  0x22   : > { %s1107_s8 = scalar_select %p965_p1, 1, 0 }
  0x23   : > { %s579_s10 = sshll.u32 %s134_s9, 8  ;;  %p975_p4 = pnand %p640_p3, %p77_p0 }
  0x24   : > { %s972_s11 = scalar_select %p66_p2, %s859_s20, %s68_s27  }
  0x25   : > { %s630_s12 = scalar_select %p77_p0, [#allocation3], [#allocation7] }
  0x26   : > { %s631_s13 = scalar_select %p77_p0, %s867_s22, 0 }
  0x27   : > { %s1122_s12 = smov (!%p640_p3, %s630_s12), [#allocation8]  ;;  %s138_s16 = scalar_lea.vmem [#allocation4], %s579_s10 }
  0x28   : > { %s1124_s13 = smov (!%p640_p3, %s631_s13), 0  ;;  %s150_s0 = sshll.u32 %s138_s16, 4  ;;  %s982_s0 = int_to_ptr.vmem [resolvable:$true] %s150_s0 }
  0x29   : > { %s140_s15 = sld [smem:[%s1122_s12 + %s1124_s13]]  ;;  %p584_p5 = scmp.ge.s32.totalorder %s871_s23, 1 }
  0x2a   : > { %p158_p6 = scmp.lt.s32.totalorder %s871_s23, 3  ;;  %s581_s25 = sshll.u32 %s867_s22, 1 }
  0x2b   : > { %s993_s10 = scalar_lea.sflag [#allocation5], %s134_s9  ;;  %p775_p9 = pneg %p975_p4 }
  0x2c   : > { %p984_p7 = pnand %p584_p5, %p158_p6  ;;  %s778_s16 = scalar_lea.hbm %s1103_s2, 8192 }
  0x2f   : > { %s628_s27 = sshll.u32 %s140_s15, 7 }
  0x30   : > { %s147_s28 = sadd.s32 %s628_s27, %s581_s25 }
  0x31   : > { %s583_s29 = sshll.u32 %s147_s28, 6 }
  0x32   : > { %s991_s7 = scalar_lea.hbm %s1103_s2, %s583_s29 }
  0x33   : > { %s773_s12 = scalar_lea.hbm %s991_s7, 4096  ;;  %p779_p13 = scmp.lt.u32.totalorder %s991_s7, %s1103_s2 }
  0x34   : > { %p774_p8 = scmp.ne.s32.totalorder %s991_s7, %s773_s12  ;;  %p780_p0 = scmp.lt.u32.totalorder %s778_s16, %s773_s12 }
  0x35   : > { %p782_p3 = scmp.lt.u32.totalorder %s773_s12, %s991_s7 }
  0x36   : > { %p776_p10 = pnand %p775_p9, %p774_p8  ;;  %p781_p2 = por %p780_p0, %p779_p13 }
  0x38   : > { %p777_p12 = pneg %p776_p10  ;;  %p783_p5 = por %p782_p3, %p781_p2 }
  0x3a   : > { %p784_p6 = pnand %p783_p5, %p777_p12 }
  0x3c   : > { %787 = shalt.err (!%p784_p6)
}
  0x3d   : > { %s788_s9 = scalar_lea.vmem %s982_s0, 4096  ;;  %s874_s28 = smov [#allocation4]  }
  0x3e   : > { %p789_p8 = scmp.ne.s32.totalorder %s982_s0, %s788_s9  ;;  %s793_s29 = sshll.u32 %s874_s28, 4  ;;  %s794_s29 = int_to_ptr.vmem [resolvable:$false] %s793_s29 }
  0x3f   : > { %s795_s30 = scalar_lea.vmem %s794_s29, 8192  ;;  %p796_p11 = scmp.lt.s32.totalorder %s982_s0, %s794_s29 }
  0x40   : > { %p791_p10 = pnand %p789_p8, %p775_p9  ;;  %p797_p13 = scmp.lt.s32.totalorder %s795_s30, %s788_s9 }
  0x42   : > { %p792_p1 = pneg %p791_p10  ;;  %p798_p0 = por %p797_p13, %p796_p11 }
  0x44   : > { %p799_p2 = pnand %p798_p0, %p792_p1 }
  0x46   : > { %802 = shalt.err (!%p799_p2)
}
  0x47   : > { %s875_s6 = smov 256   ;;  %s876_s12 = smov 128  }
  0x48   : > { %s877_s13 = smov 8   ;;  %162 = sbr.rel (%p984_p7) target bundleno = 369 (0x171), region = 28 }
  0x49   : > { %639 = dma.hbm_to_vmem [thread:$0]  (!%p975_p4), %s991_s7, 4096, %s982_s0, %s993_s10, %s875_s6, %s876_s12, %s877_s13  }
  0x4a   : > { %s164_s15 = sand.u32 (!%p984_p7), 1, %s855_s19   ;;  %p1110_p11 = scmp.ne.s32.totalorder (!%p984_p7), %s1106_s4, 0 }
  0x4b   : > { %s585_s16 = sshll.u32 (!%p984_p7), %s164_s15, 8  ;;  %s165_s25 = scalar_lea.sflag (!%p984_p7), [#allocation5], %s164_s15 }
  0x4c   : > { %s1024_s27 = scalar_lea.vmem (!%p984_p7), [#allocation4], %s585_s16 }
  0x4f   : > { %838 = dma.done.wait (%p1110_p11), %s165_s25, 4096  }
  0x50   : > { %840 = vsyncadd (%p1110_p11), %s165_s25, 4294963200  ;;  %v710_v0 = vld [vmem:[%s1024_s27 + $0x4] ss:$8 sps:$4 sm:$0xff]   ;;  %v712_v1 = vld [vmem:[%s1024_s27] ss:$8 sps:$4 sm:$0xff]   ;;  %s202_s14 = sld [smem:[#allocation3 + %s863_s21]] }
  0x51   : > { %416 = vmatprep.subr.bf16.mxu0 %v710_v0  ;;  %v713_v2 = vld [vmem:[%s1024_s27 + $0x14] ss:$8 sps:$4 sm:$0xff]   ;;  %v715_v3 = vld [vmem:[%s1024_s27 + $0x10] ss:$8 sps:$4 sm:$0xff]   ;;  %v716_v4 = vld [vmem:[%s1024_s27 + $0x24] ss:$8 sps:$4 sm:$0xff]  }
  0x52   : > { %417 = vmatpush1.bf16.msra.mxu0 %v712_v1  ;;  %v718_v5 = vld [vmem:[%s1024_s27 + $0x20] ss:$8 sps:$4 sm:$0xff]   ;;  %v719_v6 = vld [vmem:[%s1024_s27 + $0x34] ss:$8 sps:$4 sm:$0xff]   ;;  %v721_v7 = vld [vmem:[%s1024_s27 + $0x30] ss:$8 sps:$4 sm:$0xff]  }
  0x53   : > { %418 = vmatprep.subr.bf16.mxu0 %v713_v2  ;;  %v722_v8 = vld [vmem:[%s1024_s27 + $0x44] ss:$8 sps:$4 sm:$0xff]   ;;  %v724_v9 = vld [vmem:[%s1024_s27 + $0x40] ss:$8 sps:$4 sm:$0xff]   ;;  %v725_v10 = vld [vmem:[%s1024_s27 + $0x54] ss:$8 sps:$4 sm:$0xff]  }
  0x54   : > { %v727_v11 = vld [vmem:[%s1024_s27 + $0x50] ss:$8 sps:$4 sm:$0xff]   ;;  %v728_v12 = vld [vmem:[%s1024_s27 + $0x64] ss:$8 sps:$4 sm:$0xff]   ;;  %v730_v14 = vld [vmem:[%s1024_s27 + $0x60] ss:$8 sps:$4 sm:$0xff]  }
  0x55   : > { %v731_v15 = vld [vmem:[%s1024_s27 + $0x74] ss:$8 sps:$4 sm:$0xff]   ;;  %v733_v16 = vld [vmem:[%s1024_s27 + $0x70] ss:$8 sps:$4 sm:$0xff]   ;;  %v734_v17 = vld [vmem:[%s1024_s27 + $0x84] ss:$8 sps:$4 sm:$0xff]  }
  0x56   : > { %419 = vmatpush1.bf16.msra.mxu0 %v715_v3  ;;  %s587_s4 = sshll.u32 %s202_s14, 8  ;;  %v736_v18 = vld [vmem:[%s1024_s27 + $0x80] ss:$8 sps:$4 sm:$0xff]   ;;  %v737_v19 = vld [vmem:[%s1024_s27 + $0x94] ss:$8 sps:$4 sm:$0xff]   ;;  %s185_s28 = sand.u32 1, %s843_s17  }
  0x57   : > { %420 = vmatprep.subr.bf16.mxu0 %v716_v4  ;;  %s204_s0 = sshra.s32 %s587_s4, 7  ;;  %v739_v20 = vld [vmem:[%s1024_s27 + $0x90] ss:$8 sps:$4 sm:$0xff]   ;;  %v740_v21 = vld [vmem:[%s1024_s27 + $0xa4] ss:$8 sps:$4 sm:$0xff]   ;;  %s586_s29 = sshll.u32 %s185_s28, 5 }
  0x58   : > { %s588_s26 = sshll.u32 %s204_s0, 2  ;;  %v742_v22 = vld [vmem:[%s1024_s27 + $0xa0] ss:$8 sps:$4 sm:$0xff]   ;;  %v743_v23 = vld [vmem:[%s1024_s27 + $0xb4] ss:$8 sps:$4 sm:$0xff]   ;;  %s187_s30 = scalar_lea.vmem [#allocation6], %s586_s29 }
  0x59   : > { %s1046_s9 = scalar_lea.vmem %s1102_s1, %s588_s26  ;;  %v745_v24 = vld [vmem:[%s1024_s27 + $0xb0] ss:$8 sps:$4 sm:$0xff]   ;;  %v746_v25 = vld [vmem:[%s1024_s27 + $0xc4] ss:$8 sps:$4 sm:$0xff]   ;;  %v748_v26 = vld [vmem:[%s1024_s27 + $0xc0] ss:$8 sps:$4 sm:$0xff]  }
  0x5a   : > { %421 = vmatpush1.bf16.msra.mxu0 %v718_v5  ;;  %v760_v13 = vld [vmem:[%s1046_s9 + $0x4] ss:$8 sps:$4 sm:$0xff]   ;;  %v749_v27 = vld [vmem:[%s1024_s27 + $0xd4] ss:$8 sps:$4 sm:$0xff]   ;;  %v751_v28 = vld [vmem:[%s1024_s27 + $0xd0] ss:$8 sps:$4 sm:$0xff]  }
  0x5b   : > { %422 = vmatprep.subr.bf16.mxu0 %v719_v6  ;;  %448 = vmatprep.mubr.bf16.mxu0 %v760_v13  ;;  %v752_v29 = vld [vmem:[%s1024_s27 + $0xe4] ss:$8 sps:$4 sm:$0xff]   ;;  %v754_v30 = vld [vmem:[%s1024_s27 + $0xe0] ss:$8 sps:$4 sm:$0xff]   ;;  %v755_v31 = vld [vmem:[%s1024_s27 + $0xf4] ss:$8 sps:$4 sm:$0xff]  }
  0x5c   : > { %v757_v32 = vld [vmem:[%s1024_s27 + $0xf0] ss:$8 sps:$4 sm:$0xff]   ;;  %v758_v33 = vld [vmem:[%s1046_s9] ss:$8 sps:$4 sm:$0xff]   ;;  %p1111_p1 = scmp.ne.s32.totalorder %s1107_s8, 0 }
  0x5d   : > { %s629_s6 = sshll.u32 (%p1111_p1), %s863_s21, 4 }
  0x5e   : > { %423 = vmatpush1.bf16.msra.mxu0 %v721_v7  ;;  %s476_s13 = scalar_lea.vmem (%p1111_p1), %s1104_s3, %s629_s6 }
  0x5f   : > { %424 = vmatprep.subr.bf16.mxu0 %v722_v8 }
  0x62   : > { %425 = vmatpush1.bf16.msra.mxu0 %v724_v9 }
  0x63   : > { %426 = vmatprep.subr.bf16.mxu0 %v725_v10 }
  0x66   : > { %427 = vmatpush1.bf16.msra.mxu0 %v727_v11 }
  0x67   : > { %428 = vmatprep.subr.bf16.mxu0 %v728_v12 }
  0x6a   : > { %429 = vmatpush1.bf16.msra.mxu0 %v730_v14 }
  0x6b   : > { %430 = vmatprep.subr.bf16.mxu0 %v731_v15 }
  0x6e   : > { %431 = vmatpush1.bf16.msra.mxu0 %v733_v16 }
  0x6f   : > { %432 = vmatprep.subr.bf16.mxu0 %v734_v17 }
  0x72   : > { %433 = vmatpush1.bf16.msra.mxu0 %v736_v18 }
  0x73   : > { %434 = vmatprep.subr.bf16.mxu0 %v737_v19 }
  0x76   : > { %435 = vmatpush1.bf16.msra.mxu0 %v739_v20 }
  0x77   : > { %436 = vmatprep.subr.bf16.mxu0 %v740_v21 }
  0x7a   : > { %437 = vmatpush1.bf16.msra.mxu0 %v742_v22 }
  0x7b   : > { %438 = vmatprep.subr.bf16.mxu0 %v743_v23 }
  0x7e   : > { %439 = vmatpush1.bf16.msra.mxu0 %v745_v24 }
  0x7f   : > { %440 = vmatprep.subr.bf16.mxu0 %v746_v25 }
  0x82   : > { %441 = vmatpush1.bf16.msra.mxu0 %v748_v26 }
  0x83   : > { %442 = vmatprep.subr.bf16.mxu0 %v749_v27 }
  0x86   : > { %443 = vmatpush1.bf16.msra.mxu0 %v751_v28 }
  0x87   : > { %444 = vmatprep.subr.bf16.mxu0 %v752_v29 }
  0x8a   : > { %445 = vmatpush1.bf16.msra.mxu0 %v754_v30 }
  0x8b   : > { %446 = vmatprep.subr.bf16.mxu0 %v755_v31 }
  0x8e   : > { %447 = vmatpush1.bf16.msra.mxu0 %v757_v32 }
  0x91   : > { %449 = vmatmul.mubr.bf16.vlgmr.msra.gmra.mrb[0].mxu0 %v758_v33 }
 0x162   : > { %473 = sbr.rel (!%p1111_p1) target bundleno = 369 (0x171), region = 40 }
 0x164   : > { %v450_v34 = vpop.f32.mrb[0].mxu0 }
 0x165   : > { %v452_v35 = vpop.f32.mrb[1].mxu0  ;;  %463 = vst [vmem:[%s187_s30] sm:$0xff] %v450_v34 }
 0x166   : > { %v454_v36 = vpop.f32.mrb[2].mxu0  ;;  %464 = vst [vmem:[%s187_s30 + $0x8] sm:$0xff] %v452_v35 }
 0x167   : > { %v456_v37 = vpop.f32.mrb[3].mxu0  ;;  %465 = vst [vmem:[%s187_s30 + $0x10] sm:$0xff] %v454_v36 }
 0x168   : > { %466 = vst [vmem:[%s187_s30 + $0x18] sm:$0xff] %v456_v37 }
 0x16c   : > { %v489_v38 = vld [vmem:[%s187_s30] sm:$0xff] }
 0x16d   : > { %v491_v39 = vld [vmem:[%s187_s30 + $0x8] sm:$0xff]  ;;  %490 = vst [vmem:[%s476_s13] sm:$0xff] %v489_v38 }
 0x16e   : > { %v493_v40 = vld [vmem:[%s187_s30 + $0x10] sm:$0xff]  ;;  %492 = vst [vmem:[%s476_s13 + $0x8] sm:$0xff] %v491_v39 }
 0x16f   : > { %v495_v41 = vld [vmem:[%s187_s30 + $0x18] sm:$0xff]  ;;  %494 = vst [vmem:[%s476_s13 + $0x20] sm:$0xff] %v493_v40 }
 0x170   : > { %496 = vst [vmem:[%s476_s13 + $0x28] sm:$0xff] %v495_v41 }
 0x171 PF: > { %s22_s23 = sadd.s32 1, %s871_s23   ;;  %s1112_s17 = smov %s847_s18 }
 0x172   : > { %p19_p4 = scmp.ge.s32.totalorder %s22_s23, 4   ;;  %s1113_s18 = smov %s960_s5 }
 0x173   : > { %s1114_s0 = smov %s855_s19  ;;  %s1115_s19 = smov %s859_s20 }
 0x174   : > { %s1116_s20 = smov %s972_s11  ;;  %s1117_s21 = smov %s867_s22 }
 0x175   : > { %s1118_s22 = smov %s1120_s24  ;;  %21 = sbr.rel (!%p19_p4) target bundleno = 20 (0x14), region = 96 }
 0x17c   :  { %512 = vsyncpa [#allocation5], 1 }
 0x17d   :  { %514 = vsyncpa [#allocation5 + $0x1], 1 }

</bundles_post_ra>
